<compile_context>
chip_gen: v7x
topology: tpu7x:2x2x1
jax: 0.10.0
libtpu: 0.0.40
codegen_flags: <defaults>
</compile_context>

<pallas_src>
import jax
import jax.numpy as jnp
from jax import lax
from jax.experimental import pallas as pl
from jax.experimental.pallas import tpu as pltpu


def _round_up(x: int, m: int) -> int:
    return (x + m - 1) // m * m


def _make_kernel(inv_norm: float):
    """inv_norm = 1 / (L_orig * L_orig)."""

    def kernel(n_ref, s_ref, r_ref, o_ref):
        # n_ref: (Bp,) int32 in SMEM (scalar prefetch)
        # s_ref: (BQ, Lp) float32 scores for this block of queries
        # r_ref: (BQ, Lp) int32 relevance for this block of queries
        # o_ref: (1, BQ) float32 per-query losses (queries on the lane axis)
        BQ, Lp = s_ref.shape
        base = pl.program_id(0) * BQ

        # Grid/loop-invariant iotas, hoisted out of the per-query loop.
        i_iota = lax.broadcasted_iota(jnp.int32, (Lp, 1), 0)   # doc i (sublanes)
        j_iota = lax.broadcasted_iota(jnp.int32, (1, Lp), 1)   # doc j (lanes)
        q_iota = lax.broadcasted_iota(jnp.int32, (1, BQ), 1)   # query lane index

        big = jnp.int32(jnp.iinfo(jnp.int32).max)
        small = jnp.int32(jnp.iinfo(jnp.int32).min)

        def body(q, acc):
            n_q = n_ref[base + q]
            s_row = s_ref[pl.ds(q, 1), :]                 # (1, Lp): s[j]
            r_row = r_ref[pl.ds(q, 1), :]                 # (1, Lp): rel[j]
            s_row_p1 = s_row + 1.0                        # fold hinge bias on the row
            s_col = s_row.reshape(Lp, 1)                  # (Lp, 1): s[i]
            r_col = r_row.reshape(Lp, 1)                  # (Lp, 1): rel[i]

            # Fold the padding mask (i < n, j < n) into the relevance compare:
            # invalid j -> +inf so nothing beats it; invalid i -> -inf so it
            # never wins. Single full-tile compare instead of cmp + 2 ANDs +
            # 2 extra selects.
            r_row_m = jnp.where(j_iota < n_q, r_row, big)     # (1, Lp)
            r_col_m = jnp.where(i_iota < n_q, r_col, small)   # (Lp, 1)
            cond = r_col_m > r_row_m                          # (Lp, Lp)

            hinge = s_row_p1 - s_col                          # 1 - (s_i - s_j)
            loss = jnp.where(cond, jnp.maximum(hinge, 0.0), 0.0)
            total = jnp.sum(loss)                             # scalar
            return jnp.where(q_iota == q, total, acc)

        acc = lax.fori_loop(0, BQ, body, jnp.zeros((1, BQ), jnp.float32))
        o_ref[...] = acc * inv_norm

    return kernel


def pairwise_additive_loss(scores, relevance, n):
    """scores: (B, L) f32, relevance: (B, L) int, n: (B,) int -> (B,) f32 loss."""
    B, L = scores.shape

    # Pad docs to full 128-lane vregs; the n-based mask zeroes padded docs.
    Lp = _round_up(max(L, 128), 128)
    # Queries per grid step: lane-dense 128 for realistic B, small multiple of 8
    # for tiny batches so the fori_loop doesn't spin on padded queries.
    BQ = 128 if B >= 128 else _round_up(B, 8)
    num_blocks = pl.cdiv(B, BQ)
    Bp = num_blocks * BQ

    s = jnp.pad(scores.astype(jnp.float32), ((0, Bp - B), (0, Lp - L)))
    r = jnp.pad(relevance.astype(jnp.int32), ((0, Bp - B), (0, Lp - L)))
    nn = jnp.pad(n.astype(jnp.int32), (0, Bp - B))  # padded queries get n=0 -> loss 0

    out = pl.pallas_call(
        _make_kernel(1.0 / float(L * L)),
        out_shape=jax.ShapeDtypeStruct((num_blocks, BQ), jnp.float32),
        grid_spec=pltpu.PrefetchScalarGridSpec(
            num_scalar_prefetch=1,
            grid=(num_blocks,),
            in_specs=[
                pl.BlockSpec((BQ, Lp), lambda b, n_sref: (b, 0)),
                pl.BlockSpec((BQ, Lp), lambda b, n_sref: (b, 0)),
            ],
            out_specs=pl.BlockSpec((1, BQ), lambda b, n_sref: (b, 0)),
        ),
        compiler_params=pltpu.CompilerParams(
            dimension_semantics=("parallel",)),
    )(nn, s, r)
    return out.reshape(-1)[:B]


def _reference(scores, relevance, n):
    # pure-JAX mirror of the PyTorch forward (with hinge _loss_per_doc_pair)
    B, L = scores.shape
    s = scores.astype(jnp.float32)
    rel = relevance.astype(jnp.float32)
    score_diff = s[:, :, None] - s[:, None, :]
    rel_diff = rel[:, :, None] - rel[:, None, :]
    loss = jnp.where(rel_diff > 0, jnp.maximum(1.0 - score_diff, 0.0), 0.0)
    i = jnp.arange(L)
    rng = jnp.maximum(i[:, None], i[None, :])
    mask = n[:, None, None] > rng[None, :, :]
    loss = jnp.where(mask, loss, 0.0)
    return loss.reshape(B, -1).mean(axis=1)


if __name__ == "__main__":
    key = jax.random.PRNGKey(0)

    # Case 1: small canonical shape.
    k1, k2 = jax.random.split(key)
    B, L = 2, 8
    scores = jax.random.normal(k1, (B, L), dtype=jnp.float32)
    relevance = jax.random.randint(k2, (B, L), 0, 3, dtype=jnp.int32)
    n = jnp.array([5, 8], dtype=jnp.int32)

    out = jax.block_until_ready(pairwise_additive_loss(scores, relevance, n))
    ref = _reference(scores, relevance, n)
    assert jnp.allclose(out, ref, atol=1e-5), (out, ref)

    # Case 2: exercises B- and L-padding (odd L, n=0 query).
    k3, k4 = jax.random.split(k1)
    B2, L2 = 3, 20
    scores2 = jax.random.normal(k3, (B2, L2), dtype=jnp.float32)
    relevance2 = jax.random.randint(k4, (B2, L2), 0, 4, dtype=jnp.int32)
    n2 = jnp.array([20, 7, 0], dtype=jnp.int32)

    out2 = jax.block_until_ready(pairwise_additive_loss(scores2, relevance2, n2))
    ref2 = _reference(scores2, relevance2, n2)
    assert jnp.allclose(out2, ref2, atol=1e-5), (out2, ref2)

    print("KERNEL_OK")
</pallas_src>

<mosaic_0001>
module attributes {stable_mosaic.version = 11 : i64} {
  func.func @kernel(%arg0: i32, %arg1: memref<8xi32, #tpu.memory_space<smem>>, %arg2: memref<8x128xf32, #tpu.memory_space<vmem>>, %arg3: memref<8x128xi32, #tpu.memory_space<vmem>>, %arg4: memref<1x8xf32, #tpu.memory_space<vmem>>) attributes {dimension_semantics = [#tpu.dimension_semantics<parallel>], iteration_bounds = array<i64: 1>, scalar_prefetch = 1 : i64, scratch_operands = 0 : i64, tpu.core_type = #tpu.core_type<tc>, window_params = [{transform_indices = @transform_0, window_bounds = array<i64: 8, 128>}, {transform_indices = @transform_1, window_bounds = array<i64: 8, 128>}, {transform_indices = @transform_2, window_bounds = array<i64: 1, 8>}]} {
    %c8_i32 = arith.constant 8 : i32
    %0 = arith.muli %arg0, %c8_i32 : i32
    %1 = tpu.iota {dimensions = array<i32: 0>} : vector<128x1xi32>
    %2 = tpu.iota {dimensions = array<i32: 1>} : vector<1x128xi32>
    %3 = tpu.iota {dimensions = array<i32: 1>} : vector<1x8xi32>
    %cst = arith.constant 0.000000e+00 : f32
    %4 = vector.broadcast %cst : f32 to vector<1x8xf32>
    %c2147483647_i32 = arith.constant 2147483647 : i32
    %c-2147483648_i32 = arith.constant -2147483648 : i32
    %c0_i32 = arith.constant 0 : i32
    %c8_i32_0 = arith.constant 8 : i32
    %5 = arith.addi %c0_i32, %c8_i32_0 : i32
    %c1_i32 = arith.constant 1 : i32
    %6 = scf.for %arg5 = %c0_i32 to %5 step %c1_i32 iter_args(%arg6 = %4) -> (vector<1x8xf32>)  : i32 {
      %10 = arith.addi %0, %arg5 : i32
      %11 = arith.index_cast %10 : i32 to index
      %12 = memref.load %arg1[%11] : memref<8xi32, #tpu.memory_space<smem>>
      %13 = arith.index_cast %arg5 : i32 to index
      %c0_4 = arith.constant 0 : index
      %14 = vector.load %arg2[%13, %c0_4] : memref<8x128xf32, #tpu.memory_space<vmem>>, vector<1x128xf32>
      %15 = arith.index_cast %arg5 : i32 to index
      %c0_5 = arith.constant 0 : index
      %16 = vector.load %arg3[%15, %c0_5] : memref<8x128xi32, #tpu.memory_space<vmem>>, vector<1x128xi32>
      %cst_6 = arith.constant 1.000000e+00 : f32
      %17 = vector.broadcast %cst_6 : f32 to vector<1x128xf32>
      %18 = arith.addf %14, %17 : vector<1x128xf32>
      %19 = vector.shape_cast %14 : vector<1x128xf32> to vector<128x1xf32>
      %20 = vector.shape_cast %16 : vector<1x128xi32> to vector<128x1xi32>
      %21 = vector.broadcast %12 : i32 to vector<1x128xi32>
      %22 = arith.cmpi slt, %2, %21 : vector<1x128xi32>
      %23 = vector.broadcast %c2147483647_i32 : i32 to vector<1x128xi32>
      %24 = arith.select %22, %16, %23 : vector<1x128xi1>, vector<1x128xi32>
      %25 = vector.broadcast %12 : i32 to vector<128x1xi32>
      %26 = arith.cmpi slt, %1, %25 : vector<128x1xi32>
      %27 = vector.broadcast %c-2147483648_i32 : i32 to vector<128x1xi32>
      %28 = arith.select %26, %20, %27 : vector<128x1xi1>, vector<128x1xi32>
      %29 = vector.broadcast %28 : vector<128x1xi32> to vector<128x128xi32>
      %30 = vector.broadcast %24 : vector<1x128xi32> to vector<128x128xi32>
      %31 = arith.cmpi sgt, %29, %30 : vector<128x128xi32>
      %32 = vector.broadcast %18 : vector<1x128xf32> to vector<128x128xf32>
      %33 = vector.broadcast %19 : vector<128x1xf32> to vector<128x128xf32>
      %34 = arith.subf %32, %33 : vector<128x128xf32>
      %cst_7 = arith.constant 0.000000e+00 : f32
      %35 = vector.broadcast %cst_7 : f32 to vector<128x128xf32>
      %36 = arith.maximumf %34, %35 : vector<128x128xf32>
      %cst_8 = arith.constant 0.000000e+00 : f32
      %37 = vector.broadcast %cst_8 : f32 to vector<128x128xf32>
      %38 = arith.select %31, %36, %37 : vector<128x128xi1>, vector<128x128xf32>
      %39 = vector.shape_cast %38 : vector<128x128xf32> to vector<1x128x128xf32>
      %cst_9 = arith.constant dense<0.000000e+00> : vector<1xf32>
      %40 = vector.multi_reduction <add>, %39, %cst_9 [1, 2] : vector<1x128x128xf32> to vector<1xf32>
      %41 = vector.shape_cast %40 : vector<1xf32> to vector<1x1x1xf32>
      %42 = vector.extract %41[0, 0, 0] : f32 from vector<1x1x1xf32>
      %43 = vector.broadcast %arg5 : i32 to vector<1x8xi32>
      %44 = arith.cmpi eq, %3, %43 : vector<1x8xi32>
      %45 = vector.broadcast %42 : f32 to vector<1x8xf32>
      %46 = arith.select %44, %45, %arg6 : vector<1x8xi1>, vector<1x8xf32>
      scf.yield %46 : vector<1x8xf32>
    }
    %c8_i32_1 = arith.constant 8 : i32
    %cst_2 = arith.constant 1.562500e-02 : f32
    %7 = vector.broadcast %cst_2 : f32 to vector<1x8xf32>
    %8 = arith.mulf %6, %7 : vector<1x8xf32>
    %c0 = arith.constant 0 : index
    %c0_3 = arith.constant 0 : index
    %9 = vector.load %arg4[%c0, %c0_3] : memref<1x8xf32, #tpu.memory_space<vmem>>, vector<1x8xf32>
    tpu.vector_store %arg4[%c0, %c0_3], %8 {strides = array<i32>} : memref<1x8xf32, #tpu.memory_space<vmem>>, vector<1x8xf32>,
    return
  }
  func.func @transform_0(%arg0: i32, %arg1: memref<8xi32, #tpu.memory_space<smem>>) -> (i32, i32) {
    %c0_i32 = arith.constant 0 : i32
    %c0_i32_0 = arith.constant 0 : i32
    return %arg0, %c0_i32 : i32, i32
  }
  func.func @transform_1(%arg0: i32, %arg1: memref<8xi32, #tpu.memory_space<smem>>) -> (i32, i32) {
    %c0_i32 = arith.constant 0 : i32
    %c0_i32_0 = arith.constant 0 : i32
    return %arg0, %c0_i32 : i32, i32
  }
  func.func @transform_2(%arg0: i32, %arg1: memref<8xi32, #tpu.memory_space<smem>>) -> (i32, i32) {
    %c0_i32 = arith.constant 0 : i32
    %c0_i32_0 = arith.constant 0 : i32
    return %arg0, %c0_i32 : i32, i32
  }
}

</mosaic_0001>

<bundles_post_ra>
// kernel: tpu_custom_call.1
= control target key start
LH: loop header
LB: loop body
LE: loop exit
PB: predicated region body
PF: predicated region fallthrough
CT: control target
= control target key end

     0   :  { %s710_s0 = inlined_call_operand.hbm [shape: s32[8], index: 0, kind: input, shape index: {}]   ;;  %s711_s1 = inlined_call_operand.hbm [shape: f32[8,128], index: 1, kind: input, shape index: {}]   ;;  %s712_s2 = inlined_call_operand.hbm [shape: s32[8,128], index: 2, kind: input, shape index: {}]   ;;  %s713_s3 = inlined_call_operand.hbm [shape: f32[1,8], index: 3, kind: output, shape index: {}]  }
   0x1   :  { %s395_s14 = scalar_lea.hbm %s710_s0, 16 }
   0x2   :  { %p396_p0 = scmp.ne.s32.totalorder %s710_s0, %s395_s14  ;;  %p399_p1 = scmp.lt.u32.totalorder %s395_s14, %s710_s0 }
   0x4   :  { %p401_p2 = pnand %p399_p1, %p396_p0 }
   0x6   :  { %404 = shalt.err (!%p401_p2)  }
   0x7   :  { %s495_s19 = smov [#allocation3]  }
   0x8   :  { %9 = dma.hbm_to_smem %s710_s0, 16, %s495_s19, [#allocation2] }
   0x9   :  { %479 = dma.done.wait [#allocation2], 16 }
   0xa   :  { %480 = vsyncadd [#allocation2], 4294967280 }
   0xb   :  { %11 = sfence }
   0xc   :  { %12 = vsyncpa [#allocation5], 0 }
   0xd   :  { %13 = vsyncpa [#allocation8], 0 }
   0xe   :  { %14 = vsyncpa [#allocation6], 0  ;;  %s496_s22 = smov [#allocation4]   ;;  %s497_s24 = smov [#allocation7]  }
   0xf   :  { %s21_s23 = sshll.u32 %s496_s22, 4  ;;  %s31_s25 = sshll.u32 %s497_s24, 4  ;;  %s22_s23 = int_to_ptr.vmem [resolvable:$true] %s21_s23  ;;  %s32_s25 = int_to_ptr.vmem [resolvable:$true] %s31_s25 }
  0x10   :  { %s405_s28 = scalar_lea.hbm %s711_s1, 128 }
  0x11   :  { %p406_p3 = scmp.ne.s32.totalorder %s711_s1, %s405_s28  ;;  %p409_p4 = scmp.lt.u32.totalorder %s405_s28, %s711_s1 }
  0x13   :  { %p411_p5 = pnand %p409_p4, %p406_p3 }
  0x15   :  { %414 = shalt.err (!%p411_p5)
}
  0x16   :  { %s415_s5 = scalar_lea.vmem %s22_s23, 128  ;;  %p420_p7 = scmp.lt.s32.totalorder %s22_s23, %s22_s23 }
  0x17   :  { %p416_p6 = scmp.ne.s32.totalorder %s22_s23, %s415_s5  ;;  %p421_p8 = scmp.lt.s32.totalorder %s415_s5, %s415_s5 }
  0x19   :  { %p422_p9 = por %p421_p8, %p420_p7 }
  0x1b   :  { %p423_p10 = pnand %p422_p9, %p416_p6 }
  0x1d   :  { %426 = shalt.err (!%p423_p10)
}
  0x1e   :  { %24 = dma.hbm_to_vmem [thread:$0]  %s711_s1, 128, %s22_s23, [#allocation5]  }
  0x1f   :  { %s427_s10 = scalar_lea.hbm %s712_s2, 128 }
  0x20   :  { %p428_p11 = scmp.ne.s32.totalorder %s712_s2, %s427_s10  ;;  %p431_p12 = scmp.lt.u32.totalorder %s427_s10, %s712_s2 }
  0x22   :  { %p433_p13 = pnand %p431_p12, %p428_p11 }
  0x24   :  { %436 = shalt.err (!%p433_p13)
}
  0x25   :  { %s437_s15 = scalar_lea.vmem %s32_s25, 128  ;;  %p442_p1 = scmp.lt.s32.totalorder %s32_s25, %s32_s25 }
  0x26   :  { %p438_p0 = scmp.ne.s32.totalorder %s32_s25, %s437_s15  ;;  %p443_p2 = scmp.lt.s32.totalorder %s437_s15, %s437_s15 }
  0x28   :  { %p444_p3 = por %p443_p2, %p442_p1 }
  0x2a   :  { %p445_p4 = pnand %p444_p3, %p438_p0 }
  0x2c   :  { %448 = shalt.err (!%p445_p4)
}
  0x2d   :  { %34 = dma.hbm_to_vmem [thread:$0]  %s712_s2, 128, %s32_s25, [#allocation8]  }
  0x2e   :  { %481 = dma.done.wait [#allocation5], 128  }
  0x2f   :  { %482 = vsyncadd [#allocation5], 4294967168 }
  0x30   :  { %483 = dma.done.wait [#allocation8], 128  }
  0x31   :  { %484 = vsyncadd [#allocation8], 4294967168  ;;  %v42_v0 = vlaneseq  ;;  %v604_v18 = vmov 0.0   ;;  %s606_s2 = smov 0  }
  0x33   :  { %v555_v1 = vshrl.u32 %v42_v0, 7  ;;  %v557_v2 = vand.u32 127, %v42_v0 }
  0x35   :  { %v560_v3 = vadd.s32 8, %v555_v1  ;;  %v563_v4 = vadd.s32 16, %v555_v1  ;;  %v566_v5 = vadd.s32 24, %v555_v1  ;;  %v569_v6 = vadd.s32 32, %v555_v1 }
  0x36   :  { %v572_v7 = vadd.s32 40, %v555_v1  ;;  %v575_v8 = vadd.s32 48, %v555_v1  ;;  %v578_v9 = vadd.s32 56, %v555_v1  ;;  %v581_v10 = vadd.s32 64, %v555_v1 }
  0x37   :  { %v584_v11 = vadd.s32 72, %v555_v1  ;;  %v587_v12 = vadd.s32 80, %v555_v1  ;;  %v590_v13 = vadd.s32 88, %v555_v1  ;;  %v593_v14 = vadd.s32 96, %v555_v1 }
  0x38   :  { %v596_v15 = vadd.s32 104, %v555_v1  ;;  %v599_v16 = vadd.s32 112, %v555_v1  ;;  %v602_v17 = vadd.s32 120, %v555_v1 }
  0x39 LB: > { %v77_v19 = vsub.s32 0, %v555_v1  ;;  %s70_s17 = scalar_lea.vmem [#allocation4], %s493_s2  ;;  %s72_s18 = scalar_lea.vmem [#allocation7], %s493_s2  ;;  %s493_s2 = sphi %s606_s2, %s66_s2   ;;  %v489_v18 = vphi %v604_v18, %v714_v18  }
  0x3a   : > { %v71_v20 = vld [vmem:[%s70_s17] sm:$0x1]  ;;  %s69_s19 = sld [smem:[#allocation3 + %s493_s2]] }
  0x3b   : > { %v73_v21 = vld [vmem:[%s72_s18] sm:$0x1]  ;;  %v78_v22 = vrot.slane %v71_v20, %v77_v19  ;;  %v74_v23 = vadd.f32 1.0, %v71_v20 }
  0x3c   : > { %v145_v24 = vrot.slane %v73_v21, %v77_v19 }
  0x3d   : > { %88 = vbcast.lane.b32.xlu1 %v78_v22, 272  ;;  %80 = vbcast.lane.b32.xlu0 %v78_v22, 256  ;;  %v618_v25 = vrot.slane %v74_v23, %v77_v19 }
  0x40   : > { %v620_v26 = vstv %s69_s19 }
  0x41   : > { %147 = vbcast.lane.b32.xlu1 %v145_v24, 256  ;;  %vm210_vm0 = vcmp.lt.s32.totalorder %v557_v2, %v620_v26  ;;  %84 = vbcast.lane.b32.xlu0 %v78_v22, 264  ;;  %vm212_vm1 = vcmp.lt.s32.totalorder %v555_v1, %v620_v26  ;;  %vm213_vm3 = vcmp.lt.s32.totalorder %v560_v3, %v620_v26 }
  0x42   : > { %v211_v27 = vsel %vm210_vm0, %v73_v21, 2147483647  ;;  %vm214_vm5 = vcmp.lt.s32.totalorder %v563_v4, %v620_v26  ;;  %vm215_vm7 = vcmp.lt.s32.totalorder %v566_v5, %v620_v26  ;;  %vm216_vm9 = vcmp.lt.s32.totalorder %v569_v6, %v620_v26 }
  0x43   : > { %v624_v28 = vrot.slane %v211_v27, %v77_v19  ;;  %vm217_vm11 = vcmp.lt.s32.totalorder %v572_v7, %v620_v26  ;;  %vm218_vm13 = vcmp.lt.s32.totalorder %v575_v8, %v620_v26  ;;  %vm219_vm15 = vcmp.lt.s32.totalorder %v578_v9, %v620_v26 }
  0x45   : > { %92 = vbcast.lane.b32.xlu1 %v78_v22, 280  ;;  %151 = vbcast.lane.b32.xlu0 %v145_v24, 264 }
  0x49   : > { %96 = vbcast.lane.b32.xlu1 %v78_v22, 288  ;;  %155 = vbcast.lane.b32.xlu0 %v145_v24, 272 }
  0x4d   : > { %100 = vbcast.lane.b32.xlu1 %v78_v22, 296  ;;  %159 = vbcast.lane.b32.xlu0 %v145_v24, 280 }
  0x51   : > { %104 = vbcast.lane.b32.xlu1 %v78_v22, 304  ;;  %163 = vbcast.lane.b32.xlu0 %v145_v24, 288 }
  0x55   : > { %108 = vbcast.lane.b32.xlu1 %v78_v22, 312  ;;  %167 = vbcast.lane.b32.xlu0 %v145_v24, 296 }
  0x59   : > { %112 = vbcast.lane.b32.xlu1 %v78_v22, 320  ;;  %171 = vbcast.lane.b32.xlu0 %v145_v24, 304 }
  0x5d   : > { %116 = vbcast.lane.b32.xlu1 %v78_v22, 328  ;;  %175 = vbcast.lane.b32.xlu0 %v145_v24, 312 }
  0x61   : > { %120 = vbcast.lane.b32.xlu1 %v78_v22, 336  ;;  %179 = vbcast.lane.b32.xlu0 %v145_v24, 320 }
  0x65   : > { %124 = vbcast.lane.b32.xlu1 %v78_v22, 344  ;;  %183 = vbcast.lane.b32.xlu0 %v145_v24, 328 }
  0x69   : > { %128 = vbcast.lane.b32.xlu1 %v78_v22, 352  ;;  %187 = vbcast.lane.b32.xlu0 %v145_v24, 336 }
  0x6d   : > { %132 = vbcast.lane.b32.xlu1 %v78_v22, 360  ;;  %191 = vbcast.lane.b32.xlu0 %v145_v24, 344 }
  0x71   : > { %136 = vbcast.lane.b32.xlu1 %v78_v22, 368  ;;  %195 = vbcast.lane.b32.xlu0 %v145_v24, 352 }
  0x75   : > { %140 = vbcast.lane.b32.xlu1 %v78_v22, 376  ;;  %199 = vbcast.lane.b32.xlu0 %v145_v24, 360 }
  0x79   : > { %207 = vbcast.lane.b32.xlu1 %v145_v24, 376  ;;  %203 = vbcast.lane.b32.xlu0 %v145_v24, 368 }
  0xaf   : > { %v89_v29 = vpop.permute.xlu1 %88  ;;  %v81_v30 = vpop.permute.xlu0 %80 }
  0xb0   : > { %v268_v31 = vsub.f32 %v618_v25, %v81_v30  ;;  %v270_v40 = vsub.f32 %v618_v25, %v89_v29 }
  0xb2   : > { %v284_v34 = vmax.f32 %v268_v31, 0.0  ;;  %v286_v47 = vmax.f32 %v270_v40, 0.0 }
  0xb3   : > { %v148_v32 = vpop.permute.xlu1 %147  ;;  %v85_v33 = vpop.permute.xlu0 %84 }
  0xb4   : > { %v228_v35 = vsel %vm212_vm1, %v148_v32, 2147483648  ;;  %v269_v36 = vsub.f32 %v618_v25, %v85_v33  ;;  %vm220_vm1 = vcmp.lt.s32.totalorder %v581_v10, %v620_v26 }
  0xb5   : > { %vm248_vm2 = vcmp.gt.s32.totalorder %v228_v35, %v624_v28 }
  0xb6   : > { %v300_v37 = vsel %vm248_vm2, %v284_v34, 0.0  ;;  %v285_v41 = vmax.f32 %v269_v36, 0.0 }
  0xb7   : > { %v93_v38 = vpop.permute.xlu1 %92  ;;  %v152_v39 = vpop.permute.xlu0 %151 }
  0xb8   : > { %v229_v42 = vsel %vm213_vm3, %v152_v39, 2147483648  ;;  %v271_v48 = vsub.f32 %v618_v25, %v93_v38  ;;  %vm221_vm3 = vcmp.lt.s32.totalorder %v584_v11, %v620_v26 }
  0xb9   : > { %vm249_vm4 = vcmp.gt.s32.totalorder %v229_v42, %v624_v28 }
  0xba   : > { %v301_v43 = vsel %vm249_vm4, %v285_v41, 0.0  ;;  %v287_v54 = vmax.f32 %v271_v48, 0.0 }
  0xbb   : > { %v316_v44 = vadd.f32 %v301_v43, %v300_v37  ;;  %v97_v45 = vpop.permute.xlu1 %96  ;;  %v156_v46 = vpop.permute.xlu0 %155 }
  0xbc   : > { %v230_v49 = vsel %vm214_vm5, %v156_v46, 2147483648  ;;  %v272_v55 = vsub.f32 %v618_v25, %v97_v45  ;;  %vm222_vm5 = vcmp.lt.s32.totalorder %v587_v12, %v620_v26 }
  0xbd   : > { %vm250_vm6 = vcmp.gt.s32.totalorder %v230_v49, %v624_v28 }
  0xbe   : > { %v302_v50 = vsel %vm250_vm6, %v286_v47, 0.0  ;;  %v288_v61 = vmax.f32 %v272_v55, 0.0 }
  0xbf   : > { %v317_v51 = vadd.f32 %v316_v44, %v302_v50  ;;  %v101_v52 = vpop.permute.xlu1 %100  ;;  %v160_v53 = vpop.permute.xlu0 %159 }
  0xc0   : > { %v231_v56 = vsel %vm215_vm7, %v160_v53, 2147483648  ;;  %v273_v62 = vsub.f32 %v618_v25, %v101_v52  ;;  %vm223_vm7 = vcmp.lt.s32.totalorder %v590_v13, %v620_v26 }
  0xc1   : > { %vm251_vm8 = vcmp.gt.s32.totalorder %v231_v56, %v624_v28 }
  0xc2   : > { %v303_v57 = vsel %vm251_vm8, %v287_v54, 0.0  ;;  %v289_v22 = vmax.f32 %v273_v62, 0.0 }
  0xc3   : > { %v318_v58 = vadd.f32 %v317_v51, %v303_v57  ;;  %v105_v59 = vpop.permute.xlu1 %104  ;;  %v164_v60 = vpop.permute.xlu0 %163 }
  0xc4   : > { %v232_v63 = vsel %vm216_vm9, %v164_v60, 2147483648  ;;  %v274_v23 = vsub.f32 %v618_v25, %v105_v59  ;;  %vm224_vm9 = vcmp.lt.s32.totalorder %v593_v14, %v620_v26 }
  0xc5   : > { %vm252_vm10 = vcmp.gt.s32.totalorder %v232_v63, %v624_v28 }
  0xc6   : > { %v304_v0 = vsel %vm252_vm10, %v288_v61, 0.0  ;;  %v290_v32 = vmax.f32 %v274_v23, 0.0 }
  0xc7   : > { %v319_v19 = vadd.f32 %v318_v58, %v304_v0  ;;  %v109_v20 = vpop.permute.xlu1 %108  ;;  %v168_v21 = vpop.permute.xlu0 %167 }
  0xc8   : > { %v233_v24 = vsel %vm217_vm11, %v168_v21, 2147483648  ;;  %v275_v33 = vsub.f32 %v618_v25, %v109_v20  ;;  %vm225_vm11 = vcmp.lt.s32.totalorder %v596_v15, %v620_v26 }
  0xc9   : > { %vm253_vm12 = vcmp.gt.s32.totalorder %v233_v24, %v624_v28 }
  0xca   : > { %v305_v27 = vsel %vm253_vm12, %v289_v22, 0.0  ;;  %v291_v39 = vmax.f32 %v275_v33, 0.0 }
  0xcb   : > { %v320_v29 = vadd.f32 %v319_v19, %v305_v27  ;;  %v113_v30 = vpop.permute.xlu1 %112  ;;  %v172_v31 = vpop.permute.xlu0 %171 }
  0xcc   : > { %v234_v34 = vsel %vm218_vm13, %v172_v31, 2147483648  ;;  %v276_v40 = vsub.f32 %v618_v25, %v113_v30  ;;  %vm227_vm13 = vcmp.lt.s32.totalorder %v602_v17, %v620_v26 }
  0xcd   : > { %vm254_vm14 = vcmp.gt.s32.totalorder %v234_v34, %v624_v28 }
  0xce   : > { %v306_v35 = vsel %vm254_vm14, %v290_v32, 0.0  ;;  %v292_v46 = vmax.f32 %v276_v40, 0.0  ;;  %vm226_vm14 = vcmp.lt.s32.totalorder %v599_v16, %v620_v26 }
  0xcf   : > { %v321_v36 = vadd.f32 %v320_v29, %v306_v35  ;;  %v117_v37 = vpop.permute.xlu1 %116  ;;  %v176_v38 = vpop.permute.xlu0 %175 }
  0xd0   : > { %v235_v41 = vsel %vm219_vm15, %v176_v38, 2147483648  ;;  %v277_v47 = vsub.f32 %v618_v25, %v117_v37 }
  0xd1   : > { %vm255_vm0 = vcmp.gt.s32.totalorder %v235_v41, %v624_v28 }
  0xd2   : > { %v307_v42 = vsel %vm255_vm0, %v291_v39, 0.0  ;;  %v293_v53 = vmax.f32 %v277_v47, 0.0 }
  0xd3   : > { %v322_v43 = vadd.f32 %v321_v36, %v307_v42  ;;  %v121_v44 = vpop.permute.xlu1 %120  ;;  %v180_v45 = vpop.permute.xlu0 %179 }
  0xd4   : > { %v236_v48 = vsel %vm220_vm1, %v180_v45, 2147483648  ;;  %v278_v54 = vsub.f32 %v618_v25, %v121_v44 }
  0xd5   : > { %vm256_vm2 = vcmp.gt.s32.totalorder %v236_v48, %v624_v28 }
  0xd6   : > { %v308_v49 = vsel %vm256_vm2, %v292_v46, 0.0  ;;  %v294_v60 = vmax.f32 %v278_v54, 0.0 }
  0xd7   : > { %v323_v50 = vadd.f32 %v322_v43, %v308_v49  ;;  %v125_v51 = vpop.permute.xlu1 %124  ;;  %v184_v52 = vpop.permute.xlu0 %183 }
  0xd8   : > { %v237_v55 = vsel %vm221_vm3, %v184_v52, 2147483648  ;;  %v279_v61 = vsub.f32 %v618_v25, %v125_v51 }
  0xd9   : > { %vm257_vm4 = vcmp.gt.s32.totalorder %v237_v55, %v624_v28 }
  0xda   : > { %v309_v56 = vsel %vm257_vm4, %v293_v53, 0.0  ;;  %v295_v21 = vmax.f32 %v279_v61, 0.0 }
  0xdb   : > { %v324_v57 = vadd.f32 %v323_v50, %v309_v56  ;;  %v129_v58 = vpop.permute.xlu1 %128  ;;  %v188_v59 = vpop.permute.xlu0 %187 }
  0xdc   : > { %v238_v62 = vsel %vm222_vm5, %v188_v59, 2147483648  ;;  %v280_v22 = vsub.f32 %v618_v25, %v129_v58  ;;  %v340_v59 = vstv %s493_s2  ;;  %s66_s2 = sadd.s32 1, %s493_s2  }
  0xdd   : > { %vm258_vm6 = vcmp.gt.s32.totalorder %v238_v62, %v624_v28  ;;  %vm341_vm1 = vcmp.eq.s32.totalorder %v557_v2, %v340_v59  ;;  %p63_p5 = scmp.ge.s32.totalorder %s66_s2, 8  }
  0xde   : > { %v310_v63 = vsel %vm258_vm6, %v294_v60, 0.0  ;;  %v296_v31 = vmax.f32 %v280_v22, 0.0  ;;  %vm345_vm2 = vcmask (%p63_p5), 57344   ;;  %s498_s21 = smov (%p63_p5), [#allocation9]  }
  0xdf   : > { %v325_v0 = vadd.f32 %v324_v57, %v310_v63  ;;  %v133_v19 = vpop.permute.xlu1 %132  ;;  %v192_v20 = vpop.permute.xlu0 %191  ;;  %s353_s22 = sshll.u32 (%p63_p5), %s498_s21, 4  ;;  %s354_s22 = int_to_ptr.vmem [resolvable:$true] %s353_s22 }
  0xe0   : > { %v239_v23 = vsel %vm223_vm7, %v192_v20, 2147483648  ;;  %v281_v32 = vsub.f32 %v618_v25, %v133_v19  ;;  %s449_s23 = scalar_lea.vmem (%p63_p5), %s354_s22, 16  ;;  %s453_s24 = scalar_lea.vmem (%p63_p5), %s354_s22, 32 }
  0xe1   : > { %vm259_vm8 = vcmp.gt.s32.totalorder %v239_v23, %v624_v28  ;;  %p450_p6 = scmp.ne.s32.totalorder (%p63_p5), %s354_s22, %s449_s23  ;;  %p454_p7 = scmp.lt.s32.totalorder (%p63_p5), %s354_s22, %s354_s22 }
  0xe2   : > { %v311_v24 = vsel %vm259_vm8, %v295_v21, 0.0  ;;  %v297_v38 = vmax.f32 %v281_v32, 0.0  ;;  %p455_p8 = scmp.lt.s32.totalorder (%p63_p5), %s453_s24, %s449_s23 }
  0xe3   : > { %v326_v27 = vadd.f32 %v325_v0, %v311_v24  ;;  %v137_v29 = vpop.permute.xlu1 %136  ;;  %v196_v30 = vpop.permute.xlu0 %195 }
  0xe4   : > { %v240_v33 = vsel %vm224_vm9, %v196_v30, 2147483648  ;;  %v282_v39 = vsub.f32 %v618_v25, %v137_v29  ;;  %p456_p9 = por (%p63_p5), %p455_p8, %p454_p7 }
  0xe5   : > { %vm260_vm10 = vcmp.gt.s32.totalorder %v240_v33, %v624_v28 }
  0xe6   : > { %v312_v34 = vsel %vm260_vm10, %v296_v31, 0.0  ;;  %v298_v47 = vmax.f32 %v282_v39, 0.0  ;;  %p457_p10 = pnand (%p63_p5), %p456_p9, %p450_p6 }
  0xe7   : > { %v327_v35 = vadd.f32 %v326_v27, %v312_v34  ;;  %v141_v36 = vpop.permute.xlu1 %140  ;;  %v200_v37 = vpop.permute.xlu0 %199 }
  0xe8   : > { %v283_v40 = vsub.f32 %v618_v25, %v141_v36  ;;  %v241_v41 = vsel %vm225_vm11, %v200_v37, 2147483648 }
  0xe9   : > { %vm261_vm12 = vcmp.gt.s32.totalorder %v241_v41, %v624_v28 }
  0xea   : > { %v299_v42 = vmax.f32 %v283_v40, 0.0  ;;  %v313_v43 = vsel %vm261_vm12, %v297_v38, 0.0 }
  0xeb   : > { %v328_v44 = vadd.f32 %v327_v35, %v313_v43  ;;  %v208_v45 = vpop.permute.xlu1 %207  ;;  %v204_v46 = vpop.permute.xlu0 %203 }
  0xec   : > { %v243_v48 = vsel %vm227_vm13, %v208_v45, 2147483648  ;;  %v242_v49 = vsel %vm226_vm14, %v204_v46, 2147483648 }
  0xed   : > { %vm263_vm15 = vcmp.gt.s32.totalorder %v243_v48, %v624_v28  ;;  %vm262_vm0 = vcmp.gt.s32.totalorder %v242_v49, %v624_v28 }
  0xee   : > { %v314_v25 = vsel %vm262_vm0, %v298_v47, 0.0  ;;  %v315_v50 = vsel %vm263_vm15, %v299_v42, 0.0 }
  0xef   : > { %v329_v51 = vadd.f32 %v328_v44, %v314_v25 }
  0xf1   : > { %v330_v52 = vadd.f32 %v329_v51, %v315_v50 }
  0xf3   : > { %331 = vadd.xlane.f32.xlu0 %v330_v52 }
 0x180   : > { %v332_v53 = vpop.xlane.xlu0 %331 }
 0x181   : > { %v333_v26 = vrot.slane %v332_v53, 4 }
 0x183   : > { %v334_v54 = vadd.f32 %v333_v26, %v332_v53 }
 0x185   : > { %v335_v55 = vrot.slane %v334_v54, 2 }
 0x187   : > { %v336_v56 = vadd.f32 %v335_v55, %v334_v54 }
 0x189   : > { %v337_v57 = vrot.slane %v336_v56, 1 }
 0x18b   : > { %v338_v58 = vadd.f32 %v337_v57, %v336_v56 }
 0x18d   : > { %373 = vpush %v338_v58 }
 0x1bb   :  { %65 = sbr.rel (!%p63_p5) target bundleno = 57 (0x39), region = 45 }
 0x1be   : > { %s374_s20 = spop %373 }
 0x1bf   : > { %v342_v60 = vstv %s374_s20 }
 0x1c0   : > { %v343_v28 = vsel %vm341_vm1, %v342_v60, %v489_v18  }
 0x1c1   : > { %v714_v18 = vmov %v343_v28  ;;  %v344_v61 = vmul.f32 (%p63_p5), 0.015625, %v343_v28 }
 0x1c3   :  { %346 = vst.msk [vmem:[#allocation9] sm:$0x1] %vm345_vm2, %v344_v61 }
 0x1c4   :  { %460 = shalt.err (!%p457_p10)
}
 0x1c5   :  { %s461_s27 = scalar_lea.hbm %s713_s3, 16 }
 0x1c6   :  { %p462_p11 = scmp.ne.s32.totalorder %s713_s3, %s461_s27  ;;  %p465_p12 = scmp.lt.u32.totalorder %s461_s27, %s713_s3 }
 0x1c8   :  { %p467_p13 = pnand %p465_p12, %p462_p11 }
 0x1ca   :  { %470 = shalt.err (!%p467_p13)
}
 0x1cb   :  { %356 = dma.vmem_to_hbm [thread:$0]  %s354_s22, 16, %s713_s3, [#allocation6]  }
 0x1cc   :  { %485 = dma.done.wait [#allocation6], 16  }
 0x1cd   :  { %486 = vsyncadd [#allocation6], 4294967280 }
 0x1ce   :  { %360 = vsyncpa [#allocation5], 1 }
 0x1cf   :  { %361 = vsyncpa [#allocation8], 1 }
 0x1d0   :  { %362 = vsyncpa [#allocation6], 1 }

</bundles_post_ra>
